<compile_context>
chip_gen: v6e
topology: v6e:2x2x1
jax: 0.10.0
libtpu: 0.0.40
codegen_flags: <defaults>
</compile_context>

<pallas_src>
import functools

import jax
import jax.numpy as jnp
from jax.experimental import pallas as pl
from jax.experimental.pallas import tpu as pltpu


def _round_up(n, m):
    return ((n + m - 1) // m) * m


# ----------------------------------------------------------------------------
# Kernel factory (T, J are static closure constants)
#   x_ref  : (C, n)  feature-major token slab (n = bb * Lp lanes)
#   fr_ref : (1, n)  int32 frame index per lane (sentinel on per-seq pad lanes)
#   sc_ref : (9,)    SMEM scalars [scale, vw0, vw1, aw0, aw1, aw2, tw0, tw1, tw2]
#   o_ref  : (C, n)
# ----------------------------------------------------------------------------
def _make_kernel(T, J):
    def kernel(x_ref, fr_ref,
               wv1_ref, bv1_ref, wv2_ref, bv2_ref,
               wa1_ref, ba1_ref, wa2_ref, ba2_ref,
               wf1v_ref, wf1a_ref, bf1_ref, wf2_ref, bf2_ref,
               sc_ref, o_ref):
        x = x_ref[...]                       # (C, n) f32
        fr = fr_ref[...]                     # (1, n) int32

        scale = sc_ref[0]
        w0, w1 = sc_ref[1], sc_ref[2]
        a0, a1, a2 = sc_ref[3], sc_ref[4], sc_ref[5]
        t1, t2, t4 = sc_ref[6], sc_ref[7], sc_ref[8]

        def shift(k):
            # x of the frame `k` steps earlier (k < 0: later), same joint/chan.
            # Lane rotation; wrapped lanes are never selected for real columns.
            # TODO(synk): pltpu.roll is the single-op XLU-native alternative.
            return jnp.roll(x, k * J, axis=1)

        zeros = jnp.zeros_like(x)

        # ---- temporal features (replicate-pad boundaries via frame selects) --
        if T > 1:
            xm1, xp1 = shift(1), shift(-1)
            vel = jnp.where(fr >= 1, w0 * x + w1 * xm1, w0 * xp1 + w1 * x)
            m1 = jnp.where(fr >= 1, x - xm1, xp1 - x)
        else:
            vel, m1 = zeros, zeros

        if T > 2:
            xm2, xp2 = shift(2), shift(-2)
            acc = jnp.where(
                fr >= 2, a0 * x + a1 * xm1 + a2 * xm2,
                jnp.where(fr == 1, a0 * xp1 + a1 * x + a2 * xm1,
                          a0 * xp2 + a1 * xp1 + a2 * x))
            m2 = jnp.where(fr >= 2, x - xm2,
                           jnp.where(fr == 1, xp1 - xm1, xp2 - x))
        else:
            acc, m2 = zeros, zeros

        if T > 4:
            xm3, xm4 = shift(3), shift(4)
            xp3, xp4 = shift(-3), shift(-4)
            m4 = jnp.where(fr >= 4, x - xm4,
                 jnp.where(fr == 3, xp1 - xm3,
                 jnp.where(fr == 2, xp2 - xm2,
                 jnp.where(fr == 1, xp3 - xm1, xp4 - x))))
        else:
            m4 = zeros

        ms = (t1 * m1 + t2 * m2 + t4 * m4) * (1.0 / 3.0)

        # ---- motion encoders + fusion (lane-dense W @ X, MXU) ----------------
        dot = functools.partial(jnp.dot, preferred_element_type=jnp.float32)
        hv = jnp.maximum(dot(wv1_ref[...], vel) + bv1_ref[...], 0.0)
        vf = jnp.maximum(dot(wv2_ref[...], hv) + bv2_ref[...], 0.0)
        ha = jnp.maximum(dot(wa1_ref[...], acc) + ba1_ref[...], 0.0)
        af = jnp.maximum(dot(wa2_ref[...], ha) + ba2_ref[...], 0.0)
        h = jnp.maximum(dot(wf1v_ref[...], vf) + dot(wf1a_ref[...], af)
                        + bf1_ref[...], 0.0)
        enh = dot(wf2_ref[...], h) + bf2_ref[...]

        o_ref[...] = x + scale * (enh + 0.1 * ms)

    return kernel


# ----------------------------------------------------------------------------
# Parameter construction (xavier-uniform weights, zero biases like the module)
# ----------------------------------------------------------------------------
def init_params(key, dim_in=3, motion_dim=32):
    fv = motion_dim // 2
    fa = motion_dim // 2

    def xavier(k, fan_in, fan_out):
        bound = (6.0 / (fan_in + fan_out)) ** 0.5
        return jax.random.uniform(k, (fan_in, fan_out), jnp.float32, -bound, bound)

    ks = jax.random.split(key, 6)
    return dict(
        wv1=xavier(ks[0], dim_in, 2 * fv), bv1=jnp.zeros((2 * fv,), jnp.float32),
        wv2=xavier(ks[1], 2 * fv, fv),     bv2=jnp.zeros((fv,), jnp.float32),
        wa1=xavier(ks[2], dim_in, 2 * fa), ba1=jnp.zeros((2 * fa,), jnp.float32),
        wa2=xavier(ks[3], 2 * fa, fa),     ba2=jnp.zeros((fa,), jnp.float32),
        wf1=xavier(ks[4], motion_dim, motion_dim),
        bf1=jnp.zeros((motion_dim,), jnp.float32),
        wf2=xavier(ks[5], motion_dim, dim_in),
        bf2=jnp.zeros((dim_in,), jnp.float32),
        velocity_weights=jnp.array([1.0, -1.0], jnp.float32),
        acceleration_weights=jnp.array([1.0, -2.0, 1.0], jnp.float32),
        temporal_weights=jnp.ones((3,), jnp.float32),
        motion_scale=jnp.array([1.0], jnp.float32),   # aggressive_scaling=True
    )


# ----------------------------------------------------------------------------
# Wrapper: feature-major layout, weight packing, Pallas launch
# ----------------------------------------------------------------------------
@functools.partial(jax.jit, static_argnames=("tokens_per_step",))
def joint_flow_v2(x, params, tokens_per_step=8192):
    B, T, J, C = x.shape
    x = x.astype(jnp.float32)
    L = T * J
    Lp = _round_up(L, 128)                 # per-sequence pad to lane multiple

    # sequences per grid step: big lane tile to amortize per-step overhead, but
    # keep >= 2 grid steps whenever B >= 2 (v7x has 2 TensorCores).
    max_bb = max(1, tokens_per_step // Lp)
    if B >= 2:
        max_bb = min(max_bb, B // 2)
    bb = 1
    for d in range(1, B + 1):
        if B % d == 0 and d <= max_bb:
            bb = d
    n_blk = bb * Lp
    grid = (B // bb,)

    # Feature-major slab (C, B*Lp).  Pure layout plumbing; no temporal math.
    xt = jnp.transpose(x, (3, 0, 1, 2)).reshape(C, B, L)
    if Lp != L:
        xt = jnp.pad(xt, ((0, 0), (0, 0), (0, Lp - L)))
    xt = xt.reshape(C, B * Lp)

    # Frame index of every lane in a block (identical for all grid steps);
    # pad lanes get a large sentinel so they never hit the boundary fixups.
    col = jnp.arange(Lp, dtype=jnp.int32)
    fr_seq = jnp.where(col < L, col // J, jnp.int32(T + 16))
    frames = jnp.tile(fr_seq, bb).reshape(1, n_blk)

    # Pre-transposed weights (W @ X form); biases as column vectors.
    fv = params["wv2"].shape[1]
    wv1t, bv1 = params["wv1"].T, params["bv1"].reshape(-1, 1)
    wv2t, bv2 = params["wv2"].T, params["bv2"].reshape(-1, 1)
    wa1t, ba1 = params["wa1"].T, params["ba1"].reshape(-1, 1)
    wa2t, ba2 = params["wa2"].T, params["ba2"].reshape(-1, 1)
    wf1t = params["wf1"].T
    wf1v, wf1a = wf1t[:, :fv], wf1t[:, fv:]          # split fusion layer 1
    bf1 = params["bf1"].reshape(-1, 1)
    wf2t, bf2 = params["wf2"].T, params["bf2"].reshape(-1, 1)
    weights = (wv1t, bv1, wv2t, bv2, wa1t, ba1, wa2t, ba2,
               wf1v, wf1a, bf1, wf2t, bf2)

    scalars = jnp.concatenate([
        params["motion_scale"].reshape(1),
        params["velocity_weights"].reshape(2),
        params["acceleration_weights"].reshape(3),
        params["temporal_weights"].reshape(3)]).astype(jnp.float32)

    def col_spec(rows):
        return pl.BlockSpec((rows, n_blk), lambda i: (0, i))

    def const_spec(a):
        return pl.BlockSpec(a.shape, lambda i: (0, 0))

    out = pl.pallas_call(
        _make_kernel(T, J),
        out_shape=jax.ShapeDtypeStruct((C, B * Lp), jnp.float32),
        grid=grid,
        in_specs=[col_spec(C),                               # raw x slab
                  pl.BlockSpec((1, n_blk), lambda i: (0, 0)),  # frame ids
                  *[const_spec(w) for w in weights],
                  pl.BlockSpec(memory_space=pltpu.MemorySpace.SMEM)],
        out_specs=col_spec(C),
        compiler_params=pltpu.CompilerParams(
            dimension_semantics=("parallel",),
            vmem_limit_bytes=32 * 1024 * 1024),
    )(xt, frames, *weights, scalars)

    out = out.reshape(C, B, Lp)[:, :, :L].reshape(C, B, T, J)
    return jnp.transpose(out, (1, 2, 3, 0))


# ----------------------------------------------------------------------------
# Pure-JAX reference (standard layout) for the correctness check
# ----------------------------------------------------------------------------
def joint_flow_v2_ref(x, params):
    B, T, J, C = x.shape
    vw, aw, tw = (params["velocity_weights"], params["acceleration_weights"],
                  params["temporal_weights"])

    if T > 1:
        v = vw[0] * x[:, 1:] + vw[1] * x[:, :-1]
        vel = jnp.concatenate([v[:, :1], v], axis=1)
    else:
        vel = jnp.zeros_like(x)
    if T > 2:
        a = aw[0] * x[:, 2:] + aw[1] * x[:, 1:-1] + aw[2] * x[:, :-2]
        acc = jnp.concatenate([a[:, :1], a[:, :1], a], axis=1)
    else:
        acc = jnp.zeros_like(x)
    feats = []
    for i, s in enumerate((1, 2, 4)):
        if T > s:
            d = x[:, s:] - x[:, :-s]
            feats.append(tw[i] * jnp.concatenate(
                [jnp.repeat(d[:, :1], s, axis=1), d], axis=1))
        else:
            feats.append(jnp.zeros_like(x))
    ms = (feats[0] + feats[1] + feats[2]) / 3.0

    def mlp2(z, w1, b1, w2, b2):
        h = jnp.maximum(z @ w1 + b1, 0.0)
        return jnp.maximum(h @ w2 + b2, 0.0)

    vf = mlp2(vel, params["wv1"], params["bv1"], params["wv2"], params["bv2"])
    af = mlp2(acc, params["wa1"], params["ba1"], params["wa2"], params["ba2"])
    mf = jnp.concatenate([vf, af], axis=-1)
    h = jnp.maximum(mf @ params["wf1"] + params["bf1"], 0.0)
    enh = h @ params["wf2"] + params["bf2"]
    return x + params["motion_scale"][0] * (enh + 0.1 * ms)


if __name__ == "__main__":
    key = jax.random.PRNGKey(0)
    ks = jax.random.split(key, 12)

    C = 3
    params = init_params(ks[0], dim_in=C, motion_dim=32)

    # Perturb every learnable so the bias adds, SMEM scalars and boundary
    # fixups are all genuinely exercised by the check (semantics unchanged).
    params["bv1"] = 0.05 * jax.random.normal(ks[1], params["bv1"].shape)
    params["bv2"] = 0.05 * jax.random.normal(ks[2], params["bv2"].shape)
    params["ba1"] = 0.05 * jax.random.normal(ks[3], params["ba1"].shape)
    params["ba2"] = 0.05 * jax.random.normal(ks[4], params["ba2"].shape)
    params["bf1"] = 0.05 * jax.random.normal(ks[5], params["bf1"].shape)
    params["bf2"] = 0.05 * jax.random.normal(ks[6], params["bf2"].shape)
    params["motion_scale"] = jnp.array([0.85], jnp.float32)
    params["velocity_weights"] = jnp.array([1.07, -0.93], jnp.float32)
    params["acceleration_weights"] = jnp.array([0.95, -2.10, 1.05], jnp.float32)
    params["temporal_weights"] = jnp.array([1.10, 0.85, 1.25], jnp.float32)

    # Case 1: lane-aligned sequences (T*J = 128), 2 grid steps of 1 seq each.
    x1 = jax.random.normal(ks[7], (2, 8, 16, C), dtype=jnp.float32)
    out1 = jax.block_until_ready(joint_flow_v2(x1, params))
    ref1 = joint_flow_v2_ref(x1, params)
    assert out1.shape == x1.shape
    assert jnp.allclose(out1, ref1, atol=1e-4, rtol=1e-4), "case 1 mismatch"

    # Case 2: ragged length (T*J = 77 -> per-seq pad to 128), 2 seqs per step.
    x2 = jax.random.normal(ks[8], (4, 7, 11, C), dtype=jnp.float32)
    out2 = jax.block_until_ready(joint_flow_v2(x2, params))
    ref2 = joint_flow_v2_ref(x2, params)
    assert out2.shape == x2.shape
    assert jnp.allclose(out2, ref2, atol=1e-4, rtol=1e-4), "case 2 mismatch"

    print("KERNEL_OK")
</pallas_src>

<mosaic_0001>
module attributes {stable_mosaic.version = 11 : i64} {
  func.func @kernel(%arg0: i32, %arg1: memref<3x128xf32, #tpu.memory_space<vmem>>, %arg2: memref<1x128xi32, #tpu.memory_space<vmem>>, %arg3: memref<32x3xf32, #tpu.memory_space<vmem>>, %arg4: memref<32x1xf32, #tpu.memory_space<vmem>>, %arg5: memref<16x32xf32, #tpu.memory_space<vmem>>, %arg6: memref<16x1xf32, #tpu.memory_space<vmem>>, %arg7: memref<32x3xf32, #tpu.memory_space<vmem>>, %arg8: memref<32x1xf32, #tpu.memory_space<vmem>>, %arg9: memref<16x32xf32, #tpu.memory_space<vmem>>, %arg10: memref<16x1xf32, #tpu.memory_space<vmem>>, %arg11: memref<32x16xf32, #tpu.memory_space<vmem>>, %arg12: memref<32x16xf32, #tpu.memory_space<vmem>>, %arg13: memref<32x1xf32, #tpu.memory_space<vmem>>, %arg14: memref<3x32xf32, #tpu.memory_space<vmem>>, %arg15: memref<3x1xf32, #tpu.memory_space<vmem>>, %arg16: memref<9xf32, #tpu.memory_space<smem>>, %arg17: memref<3x128xf32, #tpu.memory_space<vmem>>) attributes {dimension_semantics = [#tpu.dimension_semantics<parallel>], iteration_bounds = array<i64: 2>, scalar_prefetch = 0 : i64, scratch_operands = 0 : i64, tpu.core_type = #tpu.core_type<tc>, window_params = [{transform_indices = @transform_0, window_bounds = array<i64: 3, 128>}, {pipeline_mode = #tpu.pipeline_mode<synchronous>, transform_indices = @transform_1, window_bounds = array<i64: 1, 128>}, {pipeline_mode = #tpu.pipeline_mode<synchronous>, transform_indices = @transform_2, window_bounds = array<i64: 32, 3>}, {pipeline_mode = #tpu.pipeline_mode<synchronous>, transform_indices = @transform_3, window_bounds = array<i64: 32, 1>}, {pipeline_mode = #tpu.pipeline_mode<synchronous>, transform_indices = @transform_4, window_bounds = array<i64: 16, 32>}, {pipeline_mode = #tpu.pipeline_mode<synchronous>, transform_indices = @transform_5, window_bounds = array<i64: 16, 1>}, {pipeline_mode = #tpu.pipeline_mode<synchronous>, transform_indices = @transform_6, window_bounds = array<i64: 32, 3>}, {pipeline_mode = #tpu.pipeline_mode<synchronous>, transform_indices = @transform_7, window_bounds = array<i64: 32, 1>}, {pipeline_mode = #tpu.pipeline_mode<synchronous>, transform_indices = @transform_8, window_bounds = array<i64: 16, 32>}, {pipeline_mode = #tpu.pipeline_mode<synchronous>, transform_indices = @transform_9, window_bounds = array<i64: 16, 1>}, {pipeline_mode = #tpu.pipeline_mode<synchronous>, transform_indices = @transform_10, window_bounds = array<i64: 32, 16>}, {pipeline_mode = #tpu.pipeline_mode<synchronous>, transform_indices = @transform_11, window_bounds = array<i64: 32, 16>}, {pipeline_mode = #tpu.pipeline_mode<synchronous>, transform_indices = @transform_12, window_bounds = array<i64: 32, 1>}, {pipeline_mode = #tpu.pipeline_mode<synchronous>, transform_indices = @transform_13, window_bounds = array<i64: 3, 32>}, {pipeline_mode = #tpu.pipeline_mode<synchronous>, transform_indices = @transform_14, window_bounds = array<i64: 3, 1>}, {transform_indices = @transform_15, window_bounds = array<i64: 9>}, {transform_indices = @transform_16, window_bounds = array<i64: 3, 128>}]} {
    %c0 = arith.constant 0 : index
    %c0_0 = arith.constant 0 : index
    %0 = vector.load %arg1[%c0, %c0_0] : memref<3x128xf32, #tpu.memory_space<vmem>>, vector<3x128xf32>
    %c0_1 = arith.constant 0 : index
    %c0_2 = arith.constant 0 : index
    %1 = vector.load %arg2[%c0_1, %c0_2] : memref<1x128xi32, #tpu.memory_space<vmem>>, vector<1x128xi32>
    %c0_3 = arith.constant 0 : index
    %2 = memref.load %arg16[%c0_3] : memref<9xf32, #tpu.memory_space<smem>>
    %c1 = arith.constant 1 : index
    %3 = memref.load %arg16[%c1] : memref<9xf32, #tpu.memory_space<smem>>
    %c2 = arith.constant 2 : index
    %4 = memref.load %arg16[%c2] : memref<9xf32, #tpu.memory_space<smem>>
    %c3 = arith.constant 3 : index
    %5 = memref.load %arg16[%c3] : memref<9xf32, #tpu.memory_space<smem>>
    %c4 = arith.constant 4 : index
    %6 = memref.load %arg16[%c4] : memref<9xf32, #tpu.memory_space<smem>>
    %c5 = arith.constant 5 : index
    %7 = memref.load %arg16[%c5] : memref<9xf32, #tpu.memory_space<smem>>
    %c6 = arith.constant 6 : index
    %8 = memref.load %arg16[%c6] : memref<9xf32, #tpu.memory_space<smem>>
    %c7 = arith.constant 7 : index
    %9 = memref.load %arg16[%c7] : memref<9xf32, #tpu.memory_space<smem>>
    %c8 = arith.constant 8 : index
    %10 = memref.load %arg16[%c8] : memref<9xf32, #tpu.memory_space<smem>>
    %11 = vector.extract_strided_slice %0 {offsets = [0, 112], sizes = [3, 16], strides = [1, 1]} : vector<3x128xf32> to vector<3x16xf32>
    %12 = vector.extract_strided_slice %0 {offsets = [0, 0], sizes = [3, 112], strides = [1, 1]} : vector<3x128xf32> to vector<3x112xf32>
    %13 = tpu.concatenate %11, %12 in 1 : vector<3x16xf32>, vector<3x112xf32> -> vector<3x128xf32>
    %14 = vector.extract_strided_slice %0 {offsets = [0, 16], sizes = [3, 112], strides = [1, 1]} : vector<3x128xf32> to vector<3x112xf32>
    %15 = vector.extract_strided_slice %0 {offsets = [0, 0], sizes = [3, 16], strides = [1, 1]} : vector<3x128xf32> to vector<3x16xf32>
    %16 = tpu.concatenate %14, %15 in 1 : vector<3x112xf32>, vector<3x16xf32> -> vector<3x128xf32>
    %c1_i32 = arith.constant 1 : i32
    %17 = vector.broadcast %c1_i32 : i32 to vector<1x128xi32>
    %18 = arith.cmpi sge, %1, %17 : vector<1x128xi32>
    %19 = vector.broadcast %3 : f32 to vector<3x128xf32>
    %20 = arith.mulf %19, %0 : vector<3x128xf32>
    %21 = vector.broadcast %4 : f32 to vector<3x128xf32>
    %22 = arith.mulf %21, %13 : vector<3x128xf32>
    %23 = arith.addf %20, %22 : vector<3x128xf32>
    %24 = vector.broadcast %3 : f32 to vector<3x128xf32>
    %25 = arith.mulf %24, %16 : vector<3x128xf32>
    %26 = vector.broadcast %4 : f32 to vector<3x128xf32>
    %27 = arith.mulf %26, %0 : vector<3x128xf32>
    %28 = arith.addf %25, %27 : vector<3x128xf32>
    %29 = vector.shape_cast %18 : vector<1x128xi1> to vector<1x128xi1>
    %30 = vector.broadcast %29 : vector<1x128xi1> to vector<3x128xi1>
    %31 = arith.select %30, %23, %28 : vector<3x128xi1>, vector<3x128xf32>
    %c1_i32_4 = arith.constant 1 : i32
    %32 = vector.broadcast %c1_i32_4 : i32 to vector<1x128xi32>
    %33 = arith.cmpi sge, %1, %32 : vector<1x128xi32>
    %34 = arith.subf %0, %13 : vector<3x128xf32>
    %35 = arith.subf %16, %0 : vector<3x128xf32>
    %36 = vector.shape_cast %33 : vector<1x128xi1> to vector<1x128xi1>
    %37 = vector.broadcast %36 : vector<1x128xi1> to vector<3x128xi1>
    %38 = arith.select %37, %34, %35 : vector<3x128xi1>, vector<3x128xf32>
    %39 = vector.extract_strided_slice %0 {offsets = [0, 96], sizes = [3, 32], strides = [1, 1]} : vector<3x128xf32> to vector<3x32xf32>
    %40 = vector.extract_strided_slice %0 {offsets = [0, 0], sizes = [3, 96], strides = [1, 1]} : vector<3x128xf32> to vector<3x96xf32>
    %41 = tpu.concatenate %39, %40 in 1 : vector<3x32xf32>, vector<3x96xf32> -> vector<3x128xf32>
    %42 = vector.extract_strided_slice %0 {offsets = [0, 32], sizes = [3, 96], strides = [1, 1]} : vector<3x128xf32> to vector<3x96xf32>
    %43 = vector.extract_strided_slice %0 {offsets = [0, 0], sizes = [3, 32], strides = [1, 1]} : vector<3x128xf32> to vector<3x32xf32>
    %44 = tpu.concatenate %42, %43 in 1 : vector<3x96xf32>, vector<3x32xf32> -> vector<3x128xf32>
    %c2_i32 = arith.constant 2 : i32
    %45 = vector.broadcast %c2_i32 : i32 to vector<1x128xi32>
    %46 = arith.cmpi sge, %1, %45 : vector<1x128xi32>
    %47 = vector.broadcast %5 : f32 to vector<3x128xf32>
    %48 = arith.mulf %47, %0 : vector<3x128xf32>
    %49 = vector.broadcast %6 : f32 to vector<3x128xf32>
    %50 = arith.mulf %49, %13 : vector<3x128xf32>
    %51 = arith.addf %48, %50 : vector<3x128xf32>
    %52 = vector.broadcast %7 : f32 to vector<3x128xf32>
    %53 = arith.mulf %52, %41 : vector<3x128xf32>
    %54 = arith.addf %51, %53 : vector<3x128xf32>
    %c1_i32_5 = arith.constant 1 : i32
    %55 = vector.broadcast %c1_i32_5 : i32 to vector<1x128xi32>
    %56 = arith.cmpi eq, %1, %55 : vector<1x128xi32>
    %57 = vector.broadcast %5 : f32 to vector<3x128xf32>
    %58 = arith.mulf %57, %16 : vector<3x128xf32>
    %59 = vector.broadcast %6 : f32 to vector<3x128xf32>
    %60 = arith.mulf %59, %0 : vector<3x128xf32>
    %61 = arith.addf %58, %60 : vector<3x128xf32>
    %62 = vector.broadcast %7 : f32 to vector<3x128xf32>
    %63 = arith.mulf %62, %13 : vector<3x128xf32>
    %64 = arith.addf %61, %63 : vector<3x128xf32>
    %65 = vector.broadcast %5 : f32 to vector<3x128xf32>
    %66 = arith.mulf %65, %44 : vector<3x128xf32>
    %67 = vector.broadcast %6 : f32 to vector<3x128xf32>
    %68 = arith.mulf %67, %16 : vector<3x128xf32>
    %69 = arith.addf %66, %68 : vector<3x128xf32>
    %70 = vector.broadcast %7 : f32 to vector<3x128xf32>
    %71 = arith.mulf %70, %0 : vector<3x128xf32>
    %72 = arith.addf %69, %71 : vector<3x128xf32>
    %73 = vector.shape_cast %56 : vector<1x128xi1> to vector<1x128xi1>
    %74 = vector.broadcast %73 : vector<1x128xi1> to vector<3x128xi1>
    %75 = arith.select %74, %64, %72 : vector<3x128xi1>, vector<3x128xf32>
    %76 = vector.shape_cast %46 : vector<1x128xi1> to vector<1x128xi1>
    %77 = vector.broadcast %76 : vector<1x128xi1> to vector<3x128xi1>
    %78 = arith.select %77, %54, %75 : vector<3x128xi1>, vector<3x128xf32>
    %c2_i32_6 = arith.constant 2 : i32
    %79 = vector.broadcast %c2_i32_6 : i32 to vector<1x128xi32>
    %80 = arith.cmpi sge, %1, %79 : vector<1x128xi32>
    %81 = arith.subf %0, %41 : vector<3x128xf32>
    %c1_i32_7 = arith.constant 1 : i32
    %82 = vector.broadcast %c1_i32_7 : i32 to vector<1x128xi32>
    %83 = arith.cmpi eq, %1, %82 : vector<1x128xi32>
    %84 = arith.subf %16, %13 : vector<3x128xf32>
    %85 = arith.subf %44, %0 : vector<3x128xf32>
    %86 = vector.shape_cast %83 : vector<1x128xi1> to vector<1x128xi1>
    %87 = vector.broadcast %86 : vector<1x128xi1> to vector<3x128xi1>
    %88 = arith.select %87, %84, %85 : vector<3x128xi1>, vector<3x128xf32>
    %89 = vector.shape_cast %80 : vector<1x128xi1> to vector<1x128xi1>
    %90 = vector.broadcast %89 : vector<1x128xi1> to vector<3x128xi1>
    %91 = arith.select %90, %81, %88 : vector<3x128xi1>, vector<3x128xf32>
    %92 = vector.extract_strided_slice %0 {offsets = [0, 80], sizes = [3, 48], strides = [1, 1]} : vector<3x128xf32> to vector<3x48xf32>
    %93 = vector.extract_strided_slice %0 {offsets = [0, 0], sizes = [3, 80], strides = [1, 1]} : vector<3x128xf32> to vector<3x80xf32>
    %94 = tpu.concatenate %92, %93 in 1 : vector<3x48xf32>, vector<3x80xf32> -> vector<3x128xf32>
    %95 = vector.extract_strided_slice %0 {offsets = [0, 64], sizes = [3, 64], strides = [1, 1]} : vector<3x128xf32> to vector<3x64xf32>
    %96 = vector.extract_strided_slice %0 {offsets = [0, 0], sizes = [3, 64], strides = [1, 1]} : vector<3x128xf32> to vector<3x64xf32>
    %97 = tpu.concatenate %95, %96 in 1 : vector<3x64xf32>, vector<3x64xf32> -> vector<3x128xf32>
    %98 = vector.extract_strided_slice %0 {offsets = [0, 48], sizes = [3, 80], strides = [1, 1]} : vector<3x128xf32> to vector<3x80xf32>
    %99 = vector.extract_strided_slice %0 {offsets = [0, 0], sizes = [3, 48], strides = [1, 1]} : vector<3x128xf32> to vector<3x48xf32>
    %100 = tpu.concatenate %98, %99 in 1 : vector<3x80xf32>, vector<3x48xf32> -> vector<3x128xf32>
    %101 = vector.extract_strided_slice %0 {offsets = [0, 64], sizes = [3, 64], strides = [1, 1]} : vector<3x128xf32> to vector<3x64xf32>
    %102 = vector.extract_strided_slice %0 {offsets = [0, 0], sizes = [3, 64], strides = [1, 1]} : vector<3x128xf32> to vector<3x64xf32>
    %103 = tpu.concatenate %101, %102 in 1 : vector<3x64xf32>, vector<3x64xf32> -> vector<3x128xf32>
    %c4_i32 = arith.constant 4 : i32
    %104 = vector.broadcast %c4_i32 : i32 to vector<1x128xi32>
    %105 = arith.cmpi sge, %1, %104 : vector<1x128xi32>
    %106 = arith.subf %0, %97 : vector<3x128xf32>
    %c3_i32 = arith.constant 3 : i32
    %107 = vector.broadcast %c3_i32 : i32 to vector<1x128xi32>
    %108 = arith.cmpi eq, %1, %107 : vector<1x128xi32>
    %109 = arith.subf %16, %94 : vector<3x128xf32>
    %c2_i32_8 = arith.constant 2 : i32
    %110 = vector.broadcast %c2_i32_8 : i32 to vector<1x128xi32>
    %111 = arith.cmpi eq, %1, %110 : vector<1x128xi32>
    %112 = arith.subf %44, %41 : vector<3x128xf32>
    %c1_i32_9 = arith.constant 1 : i32
    %113 = vector.broadcast %c1_i32_9 : i32 to vector<1x128xi32>
    %114 = arith.cmpi eq, %1, %113 : vector<1x128xi32>
    %115 = arith.subf %100, %13 : vector<3x128xf32>
    %116 = arith.subf %103, %0 : vector<3x128xf32>
    %117 = vector.shape_cast %114 : vector<1x128xi1> to vector<1x128xi1>
    %118 = vector.broadcast %117 : vector<1x128xi1> to vector<3x128xi1>
    %119 = arith.select %118, %115, %116 : vector<3x128xi1>, vector<3x128xf32>
    %120 = vector.shape_cast %111 : vector<1x128xi1> to vector<1x128xi1>
    %121 = vector.broadcast %120 : vector<1x128xi1> to vector<3x128xi1>
    %122 = arith.select %121, %112, %119 : vector<3x128xi1>, vector<3x128xf32>
    %123 = vector.shape_cast %108 : vector<1x128xi1> to vector<1x128xi1>
    %124 = vector.broadcast %123 : vector<1x128xi1> to vector<3x128xi1>
    %125 = arith.select %124, %109, %122 : vector<3x128xi1>, vector<3x128xf32>
    %126 = vector.shape_cast %105 : vector<1x128xi1> to vector<1x128xi1>
    %127 = vector.broadcast %126 : vector<1x128xi1> to vector<3x128xi1>
    %128 = arith.select %127, %106, %125 : vector<3x128xi1>, vector<3x128xf32>
    %129 = vector.broadcast %8 : f32 to vector<3x128xf32>
    %130 = arith.mulf %129, %38 : vector<3x128xf32>
    %131 = vector.broadcast %9 : f32 to vector<3x128xf32>
    %132 = arith.mulf %131, %91 : vector<3x128xf32>
    %133 = arith.addf %130, %132 : vector<3x128xf32>
    %134 = vector.broadcast %10 : f32 to vector<3x128xf32>
    %135 = arith.mulf %134, %128 : vector<3x128xf32>
    %136 = arith.addf %133, %135 : vector<3x128xf32>
    %cst = arith.constant 0.333333343 : f32
    %137 = vector.broadcast %cst : f32 to vector<3x128xf32>
    %138 = arith.mulf %136, %137 : vector<3x128xf32>
    %c0_10 = arith.constant 0 : index
    %c0_11 = arith.constant 0 : index
    %139 = vector.load %arg3[%c0_10, %c0_11] : memref<32x3xf32, #tpu.memory_space<vmem>>, vector<32x3xf32>
    %cst_12 = arith.constant dense<0.000000e+00> : vector<32x128xf32>
    %140 = tpu.matmul %139, %31, %cst_12 {dimension_numbers = #tpu.dot_dimension_numbers<[1], [0], [0], [1], [0, 0, 1, 1], [], []>} : vector<32x3xf32>, vector<3x128xf32>, vector<32x128xf32> -> vector<32x128xf32>
    %c0_13 = arith.constant 0 : index
    %c0_14 = arith.constant 0 : index
    %141 = vector.load %arg4[%c0_13, %c0_14] : memref<32x1xf32, #tpu.memory_space<vmem>>, vector<32x1xf32>
    %142 = vector.broadcast %141 : vector<32x1xf32> to vector<32x128xf32>
    %143 = arith.addf %140, %142 : vector<32x128xf32>
    %cst_15 = arith.constant 0.000000e+00 : f32
    %144 = vector.broadcast %cst_15 : f32 to vector<32x128xf32>
    %145 = arith.maximumf %143, %144 : vector<32x128xf32>
    %c0_16 = arith.constant 0 : index
    %c0_17 = arith.constant 0 : index
    %146 = vector.load %arg5[%c0_16, %c0_17] : memref<16x32xf32, #tpu.memory_space<vmem>>, vector<16x32xf32>
    %cst_18 = arith.constant dense<0.000000e+00> : vector<16x128xf32>
    %147 = tpu.matmul %146, %145, %cst_18 {dimension_numbers = #tpu.dot_dimension_numbers<[1], [0], [0], [1], [0, 0, 1, 1], [], []>} : vector<16x32xf32>, vector<32x128xf32>, vector<16x128xf32> -> vector<16x128xf32>
    %c0_19 = arith.constant 0 : index
    %c0_20 = arith.constant 0 : index
    %148 = vector.load %arg6[%c0_19, %c0_20] : memref<16x1xf32, #tpu.memory_space<vmem>>, vector<16x1xf32>
    %149 = vector.broadcast %148 : vector<16x1xf32> to vector<16x128xf32>
    %150 = arith.addf %147, %149 : vector<16x128xf32>
    %cst_21 = arith.constant 0.000000e+00 : f32
    %151 = vector.broadcast %cst_21 : f32 to vector<16x128xf32>
    %152 = arith.maximumf %150, %151 : vector<16x128xf32>
    %c0_22 = arith.constant 0 : index
    %c0_23 = arith.constant 0 : index
    %153 = vector.load %arg7[%c0_22, %c0_23] : memref<32x3xf32, #tpu.memory_space<vmem>>, vector<32x3xf32>
    %cst_24 = arith.constant dense<0.000000e+00> : vector<32x128xf32>
    %154 = tpu.matmul %153, %78, %cst_24 {dimension_numbers = #tpu.dot_dimension_numbers<[1], [0], [0], [1], [0, 0, 1, 1], [], []>} : vector<32x3xf32>, vector<3x128xf32>, vector<32x128xf32> -> vector<32x128xf32>
    %c0_25 = arith.constant 0 : index
    %c0_26 = arith.constant 0 : index
    %155 = vector.load %arg8[%c0_25, %c0_26] : memref<32x1xf32, #tpu.memory_space<vmem>>, vector<32x1xf32>
    %156 = vector.broadcast %155 : vector<32x1xf32> to vector<32x128xf32>
    %157 = arith.addf %154, %156 : vector<32x128xf32>
    %cst_27 = arith.constant 0.000000e+00 : f32
    %158 = vector.broadcast %cst_27 : f32 to vector<32x128xf32>
    %159 = arith.maximumf %157, %158 : vector<32x128xf32>
    %c0_28 = arith.constant 0 : index
    %c0_29 = arith.constant 0 : index
    %160 = vector.load %arg9[%c0_28, %c0_29] : memref<16x32xf32, #tpu.memory_space<vmem>>, vector<16x32xf32>
    %cst_30 = arith.constant dense<0.000000e+00> : vector<16x128xf32>
    %161 = tpu.matmul %160, %159, %cst_30 {dimension_numbers = #tpu.dot_dimension_numbers<[1], [0], [0], [1], [0, 0, 1, 1], [], []>} : vector<16x32xf32>, vector<32x128xf32>, vector<16x128xf32> -> vector<16x128xf32>
    %c0_31 = arith.constant 0 : index
    %c0_32 = arith.constant 0 : index
    %162 = vector.load %arg10[%c0_31, %c0_32] : memref<16x1xf32, #tpu.memory_space<vmem>>, vector<16x1xf32>
    %163 = vector.broadcast %162 : vector<16x1xf32> to vector<16x128xf32>
    %164 = arith.addf %161, %163 : vector<16x128xf32>
    %cst_33 = arith.constant 0.000000e+00 : f32
    %165 = vector.broadcast %cst_33 : f32 to vector<16x128xf32>
    %166 = arith.maximumf %164, %165 : vector<16x128xf32>
    %c0_34 = arith.constant 0 : index
    %c0_35 = arith.constant 0 : index
    %167 = vector.load %arg11[%c0_34, %c0_35] : memref<32x16xf32, #tpu.memory_space<vmem>>, vector<32x16xf32>
    %cst_36 = arith.constant dense<0.000000e+00> : vector<32x128xf32>
    %168 = tpu.matmul %167, %152, %cst_36 {dimension_numbers = #tpu.dot_dimension_numbers<[1], [0], [0], [1], [0, 0, 1, 1], [], []>} : vector<32x16xf32>, vector<16x128xf32>, vector<32x128xf32> -> vector<32x128xf32>
    %c0_37 = arith.constant 0 : index
    %c0_38 = arith.constant 0 : index
    %169 = vector.load %arg12[%c0_37, %c0_38] : memref<32x16xf32, #tpu.memory_space<vmem>>, vector<32x16xf32>
    %cst_39 = arith.constant dense<0.000000e+00> : vector<32x128xf32>
    %170 = tpu.matmul %169, %166, %cst_39 {dimension_numbers = #tpu.dot_dimension_numbers<[1], [0], [0], [1], [0, 0, 1, 1], [], []>} : vector<32x16xf32>, vector<16x128xf32>, vector<32x128xf32> -> vector<32x128xf32>
    %171 = arith.addf %168, %170 : vector<32x128xf32>
    %c0_40 = arith.constant 0 : index
    %c0_41 = arith.constant 0 : index
    %172 = vector.load %arg13[%c0_40, %c0_41] : memref<32x1xf32, #tpu.memory_space<vmem>>, vector<32x1xf32>
    %173 = vector.broadcast %172 : vector<32x1xf32> to vector<32x128xf32>
    %174 = arith.addf %171, %173 : vector<32x128xf32>
    %cst_42 = arith.constant 0.000000e+00 : f32
    %175 = vector.broadcast %cst_42 : f32 to vector<32x128xf32>
    %176 = arith.maximumf %174, %175 : vector<32x128xf32>
    %c0_43 = arith.constant 0 : index
    %c0_44 = arith.constant 0 : index
    %177 = vector.load %arg14[%c0_43, %c0_44] : memref<3x32xf32, #tpu.memory_space<vmem>>, vector<3x32xf32>
    %cst_45 = arith.constant dense<0.000000e+00> : vector<3x128xf32>
    %178 = tpu.matmul %177, %176, %cst_45 {dimension_numbers = #tpu.dot_dimension_numbers<[1], [0], [0], [1], [0, 0, 1, 1], [], []>} : vector<3x32xf32>, vector<32x128xf32>, vector<3x128xf32> -> vector<3x128xf32>
    %c0_46 = arith.constant 0 : index
    %c0_47 = arith.constant 0 : index
    %179 = vector.load %arg15[%c0_46, %c0_47] : memref<3x1xf32, #tpu.memory_space<vmem>>, vector<3x1xf32>
    %180 = vector.broadcast %179 : vector<3x1xf32> to vector<3x128xf32>
    %181 = arith.addf %178, %180 : vector<3x128xf32>
    %cst_48 = arith.constant 1.000000e-01 : f32
    %182 = vector.broadcast %cst_48 : f32 to vector<3x128xf32>
    %183 = arith.mulf %182, %138 : vector<3x128xf32>
    %184 = arith.addf %181, %183 : vector<3x128xf32>
    %185 = vector.broadcast %2 : f32 to vector<3x128xf32>
    %186 = arith.mulf %185, %184 : vector<3x128xf32>
    %187 = arith.addf %0, %186 : vector<3x128xf32>
    %c0_49 = arith.constant 0 : index
    %c0_50 = arith.constant 0 : index
    %188 = vector.load %arg17[%c0_49, %c0_50] : memref<3x128xf32, #tpu.memory_space<vmem>>, vector<3x128xf32>
    tpu.vector_store %arg17[%c0_49, %c0_50], %187 {strides = array<i32>} : memref<3x128xf32, #tpu.memory_space<vmem>>, vector<3x128xf32>,
    return
  }
  func.func @transform_0(%arg0: i32) -> (i32, i32) {
    %c0_i32 = arith.constant 0 : i32
    %c0_i32_0 = arith.constant 0 : i32
    return %c0_i32, %arg0 : i32, i32
  }
  func.func @transform_1(%arg0: i32) -> (i32, i32) {
    %c0_i32 = arith.constant 0 : i32
    %c0_i32_0 = arith.constant 0 : i32
    %c0_i32_1 = arith.constant 0 : i32
    return %c0_i32, %c0_i32_0 : i32, i32
  }
  func.func @transform_2(%arg0: i32) -> (i32, i32) {
    %c0_i32 = arith.constant 0 : i32
    %c0_i32_0 = arith.constant 0 : i32
    %c0_i32_1 = arith.constant 0 : i32
    return %c0_i32, %c0_i32_0 : i32, i32
  }
  func.func @transform_3(%arg0: i32) -> (i32, i32) {
    %c0_i32 = arith.constant 0 : i32
    %c0_i32_0 = arith.constant 0 : i32
    %c0_i32_1 = arith.constant 0 : i32
    return %c0_i32, %c0_i32_0 : i32, i32
  }
  func.func @transform_4(%arg0: i32) -> (i32, i32) {
    %c0_i32 = arith.constant 0 : i32
    %c0_i32_0 = arith.constant 0 : i32
    %c0_i32_1 = arith.constant 0 : i32
    return %c0_i32, %c0_i32_0 : i32, i32
  }
  func.func @transform_5(%arg0: i32) -> (i32, i32) {
    %c0_i32 = arith.constant 0 : i32
    %c0_i32_0 = arith.constant 0 : i32
    %c0_i32_1 = arith.constant 0 : i32
    return %c0_i32, %c0_i32_0 : i32, i32
  }
  func.func @transform_6(%arg0: i32) -> (i32, i32) {
    %c0_i32 = arith.constant 0 : i32
    %c0_i32_0 = arith.constant 0 : i32
    %c0_i32_1 = arith.constant 0 : i32
    return %c0_i32, %c0_i32_0 : i32, i32
  }
  func.func @transform_7(%arg0: i32) -> (i32, i32) {
    %c0_i32 = arith.constant 0 : i32
    %c0_i32_0 = arith.constant 0 : i32
    %c0_i32_1 = arith.constant 0 : i32
    return %c0_i32, %c0_i32_0 : i32, i32
  }
  func.func @transform_8(%arg0: i32) -> (i32, i32) {
    %c0_i32 = arith.constant 0 : i32
    %c0_i32_0 = arith.constant 0 : i32
    %c0_i32_1 = arith.constant 0 : i32
    return %c0_i32, %c0_i32_0 : i32, i32
  }
  func.func @transform_9(%arg0: i32) -> (i32, i32) {
    %c0_i32 = arith.constant 0 : i32
    %c0_i32_0 = arith.constant 0 : i32
    %c0_i32_1 = arith.constant 0 : i32
    return %c0_i32, %c0_i32_0 : i32, i32
  }
  func.func @transform_10(%arg0: i32) -> (i32, i32) {
    %c0_i32 = arith.constant 0 : i32
    %c0_i32_0 = arith.constant 0 : i32
    %c0_i32_1 = arith.constant 0 : i32
    return %c0_i32, %c0_i32_0 : i32, i32
  }
  func.func @transform_11(%arg0: i32) -> (i32, i32) {
    %c0_i32 = arith.constant 0 : i32
    %c0_i32_0 = arith.constant 0 : i32
    %c0_i32_1 = arith.constant 0 : i32
    return %c0_i32, %c0_i32_0 : i32, i32
  }
  func.func @transform_12(%arg0: i32) -> (i32, i32) {
    %c0_i32 = arith.constant 0 : i32
    %c0_i32_0 = arith.constant 0 : i32
    %c0_i32_1 = arith.constant 0 : i32
    return %c0_i32, %c0_i32_0 : i32, i32
  }
  func.func @transform_13(%arg0: i32) -> (i32, i32) {
    %c0_i32 = arith.constant 0 : i32
    %c0_i32_0 = arith.constant 0 : i32
    %c0_i32_1 = arith.constant 0 : i32
    return %c0_i32, %c0_i32_0 : i32, i32
  }
  func.func @transform_14(%arg0: i32) -> (i32, i32) {
    %c0_i32 = arith.constant 0 : i32
    %c0_i32_0 = arith.constant 0 : i32
    %c0_i32_1 = arith.constant 0 : i32
    return %c0_i32, %c0_i32_0 : i32, i32
  }
  func.func @transform_15(%arg0: i32) -> i32 {
    %c0_i32 = arith.constant 0 : i32
    %c0_i32_0 = arith.constant 0 : i32
    return %c0_i32 : i32
  }
  func.func @transform_16(%arg0: i32) -> (i32, i32) {
    %c0_i32 = arith.constant 0 : i32
    %c0_i32_0 = arith.constant 0 : i32
    return %c0_i32, %arg0 : i32, i32
  }
}

</mosaic_0001>

<bundles_post_ra>
// kernel: joint_flow_v2.1
= control target key start
LH: loop header
LB: loop body
LE: loop exit
PB: predicated region body
PF: predicated region fallthrough
CT: control target
= control target key end

     0   :  { %s2138_s0 = inlined_call_operand.vmem [shape: f32[3,256], index: 0, kind: input, shape index: {}]   ;;  %s2139_s1 = inlined_call_operand.vmem [shape: s32[1,128], index: 1, kind: input, shape index: {}]   ;;  %s2140_s2 = inlined_call_operand.vmem [shape: f32[32,3], index: 2, kind: input, shape index: {}]   ;;  %s2141_s3 = inlined_call_operand.vmem [shape: f32[32,1], index: 3, kind: input, shape index: {}]   ;;  %s2142_s4 = inlined_call_operand.vmem [shape: f32[16,32], index: 4, kind: input, shape index: {}]   ;;  %s2143_s5 = inlined_call_operand.vmem [shape: f32[16,1], index: 5, kind: input, shape index: {}]   ;;  %s2144_s6 = inlined_call_operand.vmem [shape: f32[32,3], index: 6, kind: input, shape index: {}]   ;;  %s2145_s7 = inlined_call_operand.vmem [shape: f32[32,1], index: 7, kind: input, shape index: {}]   ;;  %s2146_s8 = inlined_call_operand.vmem [shape: f32[16,32], index: 8, kind: input, shape index: {}]   ;;  %s2147_s9 = inlined_call_operand.vmem [shape: f32[16,1], index: 9, kind: input, shape index: {}]   ;;  %s2148_s10 = inlined_call_operand.vmem [shape: f32[32,16], index: 10, kind: input, shape index: {}]   ;;  %s2149_s11 = inlined_call_operand.vmem [shape: f32[32,16], index: 11, kind: input, shape index: {}]   ;;  %s2150_s12 = inlined_call_operand.vmem [shape: f32[32,1], index: 12, kind: input, shape index: {}]   ;;  %s2151_s13 = inlined_call_operand.vmem [shape: f32[3,32], index: 13, kind: input, shape index: {}]   ;;  %s2152_s14 = inlined_call_operand.vmem [shape: f32[3,1], index: 14, kind: input, shape index: {}]   ;;  %s2153_s15 = inlined_call_operand.vmem [shape: f32[9], index: 15, kind: input, shape index: {}]   ;;  %s2154_s16 = inlined_call_operand.vmem [shape: f32[3,256], index: 16, kind: output, shape index: {}]  }
   0x1   :  { %2155 = sst [smem:[#allocation5_spill]] %s2138_s0 }
   0x2   :  { %21 = vsyncpa [#allocation3], 0  ;;  %s1812_s21 = smov 0  }
   0x3 LB: > { %s1508_s22 = sadd.s32 4294967295, %s1714_s21   ;;  %p1510_p0 = scmp.ge.s32.totalorder %s1714_s21, 1  ;;  %s1714_s21 = sphi %s1812_s21, %s27_s21  }
   0x4   : > { %p399_p1 = scmp.lt.s32.totalorder %s1714_s21, 3  ;;  %s454_s25 = sshll.u32 %s2153_s15, 4  ;;  %s455_s25 = int_to_ptr.vmem [resolvable:$true] %s454_s25 }
   0x5   : > { %p1666_p3 = scmp.eq.s32.totalorder %s1508_s22, 0  ;;  %s1689_s27 = scalar_lea.vmem %s455_s25, 16 }
   0x6   : > { %p1823_p2 = pnand %p1510_p0, %p399_p1  ;;  %p1690_p6 = scmp.ne.s32.totalorder %s455_s25, %s1689_s27 }
   0x7   : > { %p1697_p10 = scmp.lt.s32.totalorder %s455_s25, %s455_s25  ;;  %p1698_p11 = scmp.lt.s32.totalorder %s1689_s27, %s1689_s27 }
   0x8   : > { %p1662_p4 = pneg %p1823_p2 }
   0x9   : > { %p1699_p12 = por %p1698_p11, %p1697_p10 }
   0xa   : > { %p1663_p5 = pnand %p1666_p3, %p1662_p4 }
   0xc   : > { %p1691_p7 = pneg %p1663_p5 }
   0xe   : > { %p1692_p8 = pnand %p1691_p7, %p1690_p6 }
  0x10   : > { %p1693_p9 = pneg %p1692_p8 }
  0x12   : > { %p1700_p13 = pnand %p1699_p12, %p1693_p9 }
  0x14   : > { %1703 = shalt.err (!%p1700_p13)
}
  0x15   : > { %s1716_s28 = smov [#allocation2]   ;;  %474 = sbr.rel (%p1823_p2) target bundleno = 994 (0x3e2), region = 84 }
  0x16   : > { %1665 = dma.vmem_to_smem (!%p1663_p5), %s455_s25, 16, %s1716_s28, [#allocation3]  }
  0x1a   : > { %1709 = dma.done.wait (%p1666_p3), [#allocation3], 16  }
  0x1b   : > { %1711 = vsyncadd (%p1666_p3), [#allocation3], 4294967280 }
  0x1c   : > { %480 = sfence }
  0x1d   : > { %p523_p0 = scmp.lt.s32.totalorder %s1508_s22, 1  ;;  %v1717_v0 = vmov 0   ;;  %s2157_s17 = sld [smem:[#allocation5_spill]]  ;;  %v663_v1 = vld [vmem:[%s2140_s2] sm:$0xff]  ;;  %vm691_vm0 = vcmask 23552   ;;  %v669_v3 = vld [vmem:[%s2141_s3 + $0x10] sm:$0xff]  ;;  %v560_v15 = vlaneseq }
  0x1e   : > { %1688 = vset.pattern.permute.xlu1 %v1717_v0  ;;  %1687 = vset.pattern.permute.xlu0 %v1717_v0  ;;  %s1718_s23 = smov 96   ;;  %s1719_s24 = smov 16   ;;  %v670_v4 = vld [vmem:[%s2141_s3 + $0x18] sm:$0xff]  ;;  %v668_v5 = vld [vmem:[%s2141_s3 + $0x8] sm:$0xff]  ;;  %v667_v6 = vld [vmem:[%s2141_s3] sm:$0xff]  ;;  %vm704_vm7 = vcmask 1042432  }
  0x1f   : > { %s2165_s22 = smov (!%p523_p0, %s1508_s22), 1  ;;  %1591 = vmatprep.mubr.msk.f32.mxu0 %vm691_vm0, %v663_v1  ;;  %s1720_s25 = smov 32   ;;  %v901_v7 = vld [vmem:[%s2145_s7 + $0x18] sm:$0xff]  ;;  %v900_v8 = vld [vmem:[%s2145_s7 + $0x10] sm:$0xff]  ;;  %v899_v9 = vld [vmem:[%s2145_s7 + $0x8] sm:$0xff]  ;;  %v561_v18 = vshrl.u32 %v560_v15, 7 }
  0x20   : > { %s1515_s29 = sshll.u32 %s2165_s22, 2  ;;  %s1721_s26 = smov 112   ;;  %v898_v10 = vld [vmem:[%s2145_s7] sm:$0xff]  ;;  %v800_v11 = vld [vmem:[%s2143_s5 + $0x8] sm:$0xff]  ;;  %v1328_v16 = vld [vmem:[%s2150_s12 + $0x18] sm:$0xff]  ;;  %vm572_vm14 = vcmask 261120  }
  0x21   : > { %v1029_v12 = vld [vmem:[%s2147_s9 + $0x8] sm:$0xff]  ;;  %v799_v13 = vld [vmem:[%s2143_s5] sm:$0xff]  ;;  %v1327_v17 = vld [vmem:[%s2150_s12 + $0x10] sm:$0xff]  ;;  %v1905_v22 = vsub.s32 0, %v561_v18  ;;  %s1724_s30 = smov 48   ;;  %s1519_s0 = sld [smem:[#allocation2 + $0x3]] }
  0x22   : > { %v1028_v14 = vld [vmem:[%s2147_s9] sm:$0xff]  ;;  %v1326_v19 = vld [vmem:[%s2150_s12 + $0x8] sm:$0xff]  ;;  %s1518_s19 = sld [smem:[#allocation2 + $0x2]]  ;;  %vm546_vm15 = vcmask 130048  }
  0x23   : > { %s526_s18 = scalar_lea.vmem %s2157_s17, %s1515_s29  ;;  %v1325_v20 = vld [vmem:[%s2150_s12] sm:$0xff]  ;;  %s1520_s17 = sld [smem:[#allocation2 + $0x4]] }
  0x24   : > { %v1847_v2 = vld [vmem:[%s526_s18] sm:$0x7]  ;;  %s1928_s18 = sld [smem:[#allocation2 + $0x1]] }
  0x25   : > { %573 = vrot.lane.b32.xlu1 %v1847_v2, %s1718_s23  ;;  %543 = vrot.lane.b32.xlu0 %v1847_v2, %s1719_s24  ;;  %v532_v21 = vld [vmem:[%s2139_s1] sm:$0x1]  ;;  %s1521_s20 = sld [smem:[#allocation2 + $0x5]] }
  0x26   : > { %vm628_vm1 = vcmp.eq.s32.totalorder %v532_v21, 2  ;;  %vm624_vm2 = vcmp.ge.s32.totalorder %v532_v21, 4  ;;  %vm626_vm3 = vcmp.eq.s32.totalorder %v532_v21, 3  ;;  %v1358_v29 = vld [vmem:[%s2152_s14] sm:$0x7]  ;;  %vm550_vm4 = vcmp.ge.s32.totalorder %v532_v21, 1 }
  0x27   : > { %v1908_v23 = vsel %vm628_vm1, 1, %v1717_v0  ;;  %v1913_v25 = vsel %vm626_vm3, 1, %v1717_v0  ;;  %v1916_v26 = vsel %vm624_vm2, 1, %v1717_v0  ;;  %vm585_vm5 = vcmp.eq.s32.totalorder %v532_v21, 1  ;;  %s1932_s23 = sld [smem:[#allocation2 + $0x6]] }
  0x28   : > { %v637_v24 = vrot.slane %v1908_v23, %v1905_v22  ;;  %v644_v27 = vrot.slane %v1913_v25, %v1905_v22  ;;  %v651_v28 = vrot.slane %v1916_v26, %v1905_v22  ;;  %vm576_vm6 = vcmp.ge.s32.totalorder %v532_v21, 2  ;;  %s1935_s24 = sld [smem:[#allocation2 + $0x7]]  ;;  %v665_v21 = vld [vmem:[%s2140_s2 + $0x10] sm:$0xff]  ;;  %v797_v25 = vld [vmem:[%s2142_s4] sm:$0xff] }
  0x29   : > { %569 = vrot.lane.b32.xlu1 %v1847_v2, %s1720_s25  ;;  %547 = vrot.lane.b32.xlu0 %v1847_v2, %s1721_s26  ;;  %s1722_s25 = smov 64   ;;  %s1723_s26 = smov 80   ;;  %v559_v30 = vsel %vm550_vm4, 1, %v1717_v0  ;;  %v596_v31 = vsel %vm585_vm5, 1, %v1717_v0  ;;  %v603_v32 = vsel %vm576_vm6, 1, %v1717_v0  ;;  %v577_v36 = vstv %s1519_s0 }
  0x2a   : > { %v563_v33 = vrot.slane %v559_v30, %v1905_v22  ;;  %v600_v34 = vrot.slane %v596_v31, %v1905_v22  ;;  %v607_v35 = vrot.slane %v603_v32, %v1905_v22  ;;  %v551_v39 = vstv %s1928_s18  ;;  %v666_v32 = vld [vmem:[%s2140_s2 + $0x18] sm:$0xff]  ;;  %s1524_s27 = sld [smem:[#allocation2 + $0x8]]  ;;  %1605 = vmatprep.mubr.msk.f32.mxu1 %vm572_vm14, %v797_v25 }
  0x2b   : > { %v553_v40 = vstv %s1518_s19  ;;  %v579_v41 = vstv %s1520_s17  ;;  %v582_v42 = vstv %s1521_s20  ;;  %v578_v45 = vmul.f32 %v577_v36, %v1847_v2  ;;  %s533_s0 = sld [smem:[#allocation2]]  ;;  %s530_s19 = scalar_lea.vmem %s2154_s16, %s1515_s29 }
  0x2c   : > { %vm1945_vm8 = vcmp.eq.s32.totalorder %v563_v33, 1  ;;  %vm1949_vm9 = vcmp.eq.s32.totalorder %v600_v34, 1  ;;  %v587_v46 = vmul.f32 %v579_v41, %v1847_v2  ;;  %v594_v47 = vmul.f32 %v582_v42, %v1847_v2  ;;  %v894_v33 = vld [vmem:[%s2144_s6] sm:$0xff] }
  0x2d   : > { %683 = vperm.xlu1 %1688, %v669_v3   ;;  %688 = vperm.xlu0 %1687, %v670_v4   ;;  %vm1956_vm10 = vcmp.eq.s32.totalorder %v607_v35, 1  ;;  %v552_v49 = vmul.f32 %v551_v39, %v1847_v2  ;;  %v557_v51 = vmul.f32 %v553_v40, %v1847_v2  ;;  %v654_v52 = vstv %s1932_s23 }
  0x2e   : > { %v656_v58 = vstv %s1935_s24  ;;  %vm638_vm11 = vcmp.eq.s32.totalorder %v637_v24, 1  ;;  %vm645_vm12 = vcmp.eq.s32.totalorder %v644_v27, 1  ;;  %vm652_vm13 = vcmp.eq.s32.totalorder %v651_v28, 1 }
  0x30   : > { %v659_v24 = vstv %s1524_s27 }
  0x31   : > { %678 = vperm.xlu1 %1688, %v668_v5   ;;  %673 = vperm.xlu0 %1687, %v667_v6  }
  0x35   : > { %919 = vperm.xlu1 %1688, %v901_v7   ;;  %914 = vperm.xlu0 %1687, %v900_v8  }
  0x39   : > { %909 = vperm.xlu1 %1688, %v899_v9   ;;  %904 = vperm.xlu0 %1687, %v898_v10  }
  0x3d   : > { %808 = vperm.xlu1 %1688, %v800_v11   ;;  %1037 = vperm.xlu0 %1687, %v1029_v12  }
  0x41   : > { %803 = vperm.xlu1 %1688, %v799_v13   ;;  %1032 = vperm.xlu0 %1687, %v1028_v14  }
  0x45   : > { %1346 = vperm.xlu1 %1688, %v1328_v16   ;;  %1341 = vperm.xlu0 %1687, %v1327_v17   ;;  %v664_v17 = vld [vmem:[%s2140_s2 + $0x8] sm:$0xff] }
  0x49   : > { %1336 = vperm.xlu1 %1688, %v1326_v19   ;;  %1331 = vperm.xlu0 %1687, %v1325_v20  }
  0x4d   : > { %618 = vrot.lane.b32.xlu1 %v1847_v2, %s1722_s25  ;;  %621 = vrot.lane.b32.xlu0 %v1847_v2, %s1723_s26 }
  0x51   : > { %615 = vrot.lane.b32.xlu1 %v1847_v2, %s1724_s30  ;;  %1361 = vperm.xlu0 %1687, %v1358_v29  }
  0x97   : > { %v1940_v37 = vpop.permute.xlu1 %573  ;;  %v1942_v38 = vpop.permute.xlu0 %543 }
  0x98   : > { %v554_v50 = vmul.f32 %v553_v40, %v1942_v38  ;;  %v591_v53 = vmul.f32 %v577_v36, %v1940_v37  ;;  %v612_v54 = vsub.f32 %v1940_v37, %v1847_v2  ;;  %v580_v56 = vmul.f32 %v579_v41, %v1942_v38 }
  0x99   : > { %v566_v62 = vsub.f32 %v1847_v2, %v1942_v38  ;;  %v589_v5 = vmul.f32 %v582_v42, %v1942_v38 }
  0x9a   : > { %v555_v6 = vadd.f32 %v554_v50, %v552_v49  ;;  %v581_v12 = vadd.f32 %v580_v56, %v578_v45 }
  0x9b   : > { %v1967_v55 = vpop.permute.xlu1 %569  ;;  %v1970_v57 = vpop.permute.xlu0 %547 }
  0x9c   : > { %v610_v59 = vsub.f32 %v1847_v2, %v1967_v55  ;;  %v629_v60 = vsub.f32 %v1940_v37, %v1967_v55  ;;  %v586_v61 = vmul.f32 %v577_v36, %v1970_v57  ;;  %v592_v63 = vmul.f32 %v579_v41, %v1970_v57  ;;  %v895_v36 = vld [vmem:[%s2144_s6 + $0x8] sm:$0xff] }
  0x9d   : > { %v611_v0 = vsub.f32 %v1970_v57, %v1942_v38  ;;  %v556_v1 = vmul.f32 %v551_v39, %v1970_v57  ;;  %v567_v3 = vsub.f32 %v1970_v57, %v1847_v2  ;;  %v583_v4 = vmul.f32 %v582_v42, %v1967_v55  ;;  %v896_v39 = vld [vmem:[%s2144_s6 + $0x10] sm:$0xff]  ;;  %v897_v42 = vld [vmem:[%s2144_s6 + $0x18] sm:$0xff] }
  0x9e   : > { %v588_v7 = vadd.f32 %v587_v46, %v586_v61  ;;  %v593_v10 = vadd.f32 %v592_v63, %v591_v53 }
  0x9f   : > { %v558_v8 = vadd.f32 %v557_v51, %v556_v1  ;;  %v568_v9 = vsel %vm1945_vm8, %v566_v62, %v567_v3  ;;  %v613_v11 = vsel %vm1949_vm9, %v611_v0, %v612_v54  ;;  %v584_v20 = vadd.f32 %v583_v4, %v581_v12 }
  0xa0   : > { %v655_v13 = vmul.f32 %v654_v52, %v568_v9  ;;  %v590_v14 = vadd.f32 %v589_v5, %v588_v7  ;;  %v614_v15 = vsel %vm1956_vm10, %v610_v59, %v613_v11  ;;  %v595_v18 = vadd.f32 %v594_v47, %v593_v10 }
  0xa1   : > { %v565_v16 = vsel %vm1945_vm8, %v555_v6, %v558_v8  ;;  %v657_v19 = vmul.f32 %v656_v58, %v614_v15  ;;  %v798_v15 = vld [vmem:[%s2142_s4 + $0x8] sm:$0xff] }
  0xa2   : > { %1589 = vmatprep.subr.msk.mxu0 %vm704_vm7, %v565_v16  ;;  %v602_v29 = vsel %vm1949_vm9, %v590_v14, %v595_v18 }
  0xa3   : > { %1590 = vmatpush3.msk.msra.mxu0 %vm704_vm7, %v565_v16  ;;  %v658_v30 = vadd.f32 %v657_v19, %v655_v13  ;;  %v609_v31 = vsel %vm1956_vm10, %v584_v20, %v602_v29  ;;  %v1026_v19 = vld [vmem:[%s2146_s8] sm:$0xff] }
  0xa4   : > { %1592 = vmatmul.mubr.msk.f32.vlgmr.msra.gmra.mxu0 %vm691_vm0, %v664_v17  ;;  %1608 = vmatprep.subr.msk.mxu0 %vm704_vm7, %v609_v31 }
  0xa5   : > { %1594 = vmatprep.mubr.msk.f32.mxu0 %vm691_vm0, %v665_v21  ;;  %1609 = vmatpush3.msk.msra.mxu0 %vm704_vm7, %v609_v31  ;;  %v1027_v31 = vld [vmem:[%s2146_s8 + $0x8] sm:$0xff] }
  0xa8   : > { %1595 = vmatmul.mubr.msk.f32.gmra.mxu0 %vm691_vm0, %v666_v32  ;;  %v684_v34 = vpop.permute.xlu1 %683  ;;  %v689_v35 = vpop.permute.xlu0 %688  ;;  %v1123_v32 = vld [vmem:[%s2148_s10] sm:$0xff] }
  0xa9   : > { %1610 = vmatprep.mubr.msk.f32.mxu0 %vm691_vm0, %v894_v33  ;;  %v1127_v33 = vld [vmem:[%s2149_s11] sm:$0xff] }
  0xac   : > { %1611 = vmatmul.mubr.msk.f32.vlgmr.msra.gmra.mxu0 %vm691_vm0, %v895_v36  ;;  %v679_v40 = vpop.permute.xlu1 %678  ;;  %v674_v41 = vpop.permute.xlu0 %673 }
  0xad   : > { %1613 = vmatprep.mubr.msk.f32.mxu0 %vm691_vm0, %v896_v39 }
  0xb0   : > { %1614 = vmatmul.mubr.msk.f32.gmra.mxu0 %vm691_vm0, %v897_v42  ;;  %v920_v43 = vpop.permute.xlu1 %919  ;;  %v915_v45 = vpop.permute.xlu0 %914  ;;  %v1124_v42 = vld [vmem:[%s2148_s10 + $0x8] sm:$0xff]  ;;  %vm1726_vm0 = vmmov 0  }
  0xb1   : > { %1631 = vmatprep.mubr.msk.f32.mxu0 %vm546_vm15, %v1127_v33 }
  0xb4   : > { %v910_v46 = vpop.permute.xlu1 %909  ;;  %v905_v47 = vpop.permute.xlu0 %904 }
  0xb8   : > { %v2032_v48 = vpop.permute.xlu1 %808  ;;  %v2034_v49 = vpop.permute.xlu0 %1037 }
  0xbc   : > { %v2036_v50 = vpop.permute.xlu1 %803  ;;  %v2038_v51 = vpop.permute.xlu0 %1032 }
  0xc0   : > { %v2040_v52 = vpop.permute.xlu1 %1346  ;;  %v2042_v53 = vpop.permute.xlu0 %1341 }
  0xc4   : > { %v2044_v54 = vpop.permute.xlu1 %1336  ;;  %v2046_v56 = vpop.permute.xlu0 %1331 }
  0xc8   : > { %v619_v58 = vpop.permute.xlu1 %618  ;;  %v622_v59 = vpop.permute.xlu0 %621 }
  0xc9   : > { %v631_v61 = vsub.f32 %v619_v58, %v1847_v2  ;;  %v630_v62 = vsub.f32 %v622_v59, %v1942_v38  ;;  %v625_v0 = vsub.f32 %v1847_v2, %v619_v58 }
  0xcb   : > { %v632_v63 = vsel %vm1949_vm9, %v630_v62, %v631_v61  ;;  %v1129_v61 = vld [vmem:[%s2149_s11 + $0x10] sm:$0xff]  ;;  %v1725_v62 = vmov 0.0  }
  0xcc   : > { %v616_v1 = vpop.permute.xlu1 %615  ;;  %v639_v3 = vsel %vm638_vm11, %v629_v60, %v632_v63 }
  0xcd   : > { %v627_v23 = vsub.f32 %v1970_v57, %v616_v1 }
  0xcf   : > { %v646_v38 = vsel %vm645_vm12, %v627_v23, %v639_v3 }
  0xd0   : > { %v653_v44 = vsel %vm652_vm13, %v625_v0, %v646_v38 }
  0xd1   : > { %v660_v4 = vmul.f32 %v659_v24, %v653_v44 }
  0xd3   : > { %v2066_v5 = vadd.f32 %v660_v4, %v658_v30 }
 0x164   : > { %v1593_v27 = vpop.f32.mrf.mxu0 }
 0x165   : > { %v780_v28 = vadd.f32 %v1593_v27, %v679_v40 }
 0x166   : > { %v774_v37 = vpop.f32.mrf.mxu0 }
 0x167   : > { %v775_v7 = vadd.f32 %v774_v37, %v674_v41  ;;  %v794_v10 = vmax.f32 %v780_v28, 0.0 }
 0x168   : > { %v1596_v55 = vpop.f32.mrf.mxu0 }
 0x169   : > { %v790_v22 = vadd.f32 %v1596_v55, %v689_v35  ;;  %v793_v12 = vmax.f32 %v775_v7, 0.0 }
 0x16a   : > { %v784_v26 = vpop.f32.mrf.mxu0 }
 0x16b   : > { %v796_v57 = vmax.f32 %v790_v22, 0.0  ;;  %v785_v60 = vadd.f32 %v784_v26, %v684_v34 }
 0x16c   : > { %v1612_v6 = vpop.f32.mrf.mxu0 }
 0x16d   : > { %v795_v8 = vmax.f32 %v785_v60, 0.0  ;;  %1597 = vmatprep.subr.mxu1 %v796_v57  ;;  %v1009_v16 = vadd.f32 %v1612_v6, %v910_v46 }
 0x16e   : > { %1598 = vmatpush3.msra.mxu1 %v796_v57  ;;  %v1003_v9 = vpop.f32.mrf.mxu0 }
 0x16f   : > { %1599 = vmatprep.subr.mxu1 %v795_v8  ;;  %v1004_v20 = vadd.f32 %v1003_v9, %v905_v47  ;;  %v1023_v29 = vmax.f32 %v1009_v16, 0.0 }
 0x170   : > { %1600 = vmatpush3.msra.mxu1 %v795_v8  ;;  %v1615_v11 = vpop.f32.mrf.mxu0 }
 0x171   : > { %v1019_v13 = vadd.f32 %v1615_v11, %v920_v43  ;;  %1601 = vmatprep.subr.mxu1 %v794_v10  ;;  %v1022_v30 = vmax.f32 %v1004_v20, 0.0  ;;  %v1125_v43 = vld [vmem:[%s2148_s10 + $0x10] sm:$0xff] }
 0x172   : > { %1602 = vmatpush3.msra.mxu1 %v794_v10  ;;  %v1013_v14 = vpop.f32.mrf.mxu0  ;;  %v1439_v10 = vstv %s533_s0 }
 0x173   : > { %v1025_v17 = vmax.f32 %v1019_v13, 0.0  ;;  %v1014_v18 = vadd.f32 %v1013_v14, %v915_v45  ;;  %1603 = vmatprep.subr.mxu1 %v793_v12 }
 0x174   : > { %1604 = vmatpush3.msra.mxu1 %v793_v12 }
 0x175   : > { %v1024_v21 = vmax.f32 %v1014_v18, 0.0  ;;  %1606 = vmatmul.mubr.msk.f32.vlgmr.msra.gmra.mxu1 %vm572_vm14, %v798_v15  ;;  %1616 = vmatprep.subr.mxu1 %v1025_v17 }
 0x176   : > { %1617 = vmatpush3.msra.mxu1 %v1025_v17  ;;  %1624 = vmatprep.mubr.msk.f32.mxu1 %vm572_vm14, %v1026_v19 }
 0x177   : > { %1618 = vmatprep.subr.mxu1 %v1024_v21 }
 0x178   : > { %1619 = vmatpush3.msra.mxu1 %v1024_v21 }
 0x179   : > { %1620 = vmatprep.subr.mxu1 %v1023_v29 }
 0x17a   : > { %1621 = vmatpush3.msra.mxu1 %v1023_v29 }
 0x17b   : > { %1622 = vmatprep.subr.mxu1 %v1022_v30 }
 0x17c   : > { %1623 = vmatpush3.msra.mxu1 %v1022_v30 }
 0x17d   : > { %1625 = vmatmul.mubr.msk.f32.vlgmr.msra.gmra.mxu1 %vm572_vm14, %v1027_v31 }
 0x17e   : > { %1641 = vmatprep.mubr.msk.f32.mxu1 %vm546_vm15, %v1123_v32 }
 0x235   : > { %v1607_v34 = vpop.f32.mrf.mxu1 }
 0x236   : > { %v889_v35 = vadd.f32 %v1607_v34, %v2032_v48  ;;  %v1126_v48 = vld [vmem:[%s2148_s10 + $0x18] sm:$0xff] }
 0x237   : > { %v883_v36 = vpop.f32.mrf.mxu1 }
 0x238   : > { %v893_v39 = vmax.f32 %v889_v35, 0.0  ;;  %v884_v40 = vadd.f32 %v883_v36, %v2036_v50 }
 0x23a   : > { %v892_v41 = vmax.f32 %v884_v40, 0.0  ;;  %1637 = vmatprep.subr.mxu1 %v893_v39 }
 0x23b   : > { %1638 = vmatpush3.msra.mxu1 %v893_v39 }
 0x23c   : > { %1639 = vmatprep.subr.mxu1 %v892_v41 }
 0x23d   : > { %v1626_v45 = vpop.f32.mrf.mxu1  ;;  %1640 = vmatpush3.msra.mxu1 %v892_v41 }
 0x23e   : > { %v1118_v46 = vadd.f32 %v1626_v45, %v2034_v49  ;;  %1642 = vmatmul.mubr.msk.f32.vlgmr.msra.gmra.mxu1 %vm546_vm15, %v1124_v42  ;;  %v1128_v49 = vld [vmem:[%s2149_s11 + $0x8] sm:$0xff] }
 0x23f   : > { %v1112_v47 = vpop.f32.mrf.mxu1  ;;  %1644 = vmatprep.mubr.msk.f32.mxu1 %vm546_vm15, %v1125_v43 }
 0x240   : > { %v1122_v50 = vmax.f32 %v1118_v46, 0.0  ;;  %v1113_v58 = vadd.f32 %v1112_v47, %v2038_v51  ;;  %v1130_v51 = vld [vmem:[%s2149_s11 + $0x18] sm:$0xff] }
 0x242   : > { %v1121_v59 = vmax.f32 %v1113_v58, 0.0  ;;  %1627 = vmatprep.subr.mxu0 %v1122_v50  ;;  %1645 = vmatmul.mubr.msk.f32.gmra.mxu1 %vm546_vm15, %v1126_v48 }
 0x243   : > { %1628 = vmatpush3.msra.mxu0 %v1122_v50 }
 0x244   : > { %1629 = vmatprep.subr.mxu0 %v1121_v59 }
 0x245   : > { %1630 = vmatpush3.msra.mxu0 %v1121_v59 }
 0x246   : > { %1632 = vmatmul.mubr.msk.f32.vlgmr.msra.gmra.mxu0 %vm546_vm15, %v1128_v49  ;;  %1647 = vmatprep.subr.mxu0 %v1725_v62 }
 0x247   : > { %1634 = vmatprep.mubr.msk.f32.mxu0 %vm546_vm15, %v1129_v61 }
 0x24a   : > { %1635 = vmatmul.mubr.msk.f32.gmra.mxu0 %vm546_vm15, %v1130_v51 }
 0x24b   : > { %1655 = vmatprep.mubr.msk.f32.mxu0 %vm1726_vm0, %v1725_v62 }
 0x2fe   : > { %v1643_v63 = vpop.f32.mrf.mxu1 }
 0x300   : > { %v1306_v0 = vpop.f32.mrf.mxu1 }
 0x302   : > { %v1646_v23 = vpop.f32.mrf.mxu1 }
 0x304   : > { %v1316_v25 = vpop.f32.mrf.mxu1 }
 0x306   : > { %v1633_v1 = vpop.f32.mrf.mxu0 }
 0x307   : > { %v1312_v38 = vadd.f32 %v1643_v63, %v1633_v1 }
 0x308   : > { %v1209_v3 = vpop.f32.mrf.mxu0 }
 0x309   : > { %v1307_v27 = vadd.f32 %v1306_v0, %v1209_v3  ;;  %v1350_v22 = vadd.f32 %v2044_v54, %v1312_v38  ;;  %v1362_v54 = vpop.permute.xlu0 %1361 }
 0x30a   : > { %v1636_v24 = vpop.f32.mrf.mxu0 }
 0x30b   : > { %v1322_v44 = vadd.f32 %v1646_v23, %v1636_v24  ;;  %v1349_v57 = vadd.f32 %v2046_v56, %v1307_v27  ;;  %v1354_v6 = vmax.f32 %v1350_v22, 0.0 }
 0x30c   : > { %v1219_v4 = vpop.f32.mrf.mxu0 }
 0x30d   : > { %v1352_v37 = vadd.f32 %v2040_v52, %v1322_v44  ;;  %v1317_v55 = vadd.f32 %v1316_v25, %v1219_v4  ;;  %v1353_v7 = vmax.f32 %v1349_v57, 0.0  ;;  %v1357_v52 = vld [vmem:[%s2151_s13] sm:$0x7] }
 0x30f   : > { %v1356_v26 = vmax.f32 %v1352_v37, 0.0  ;;  %v1351_v28 = vadd.f32 %v2042_v53, %v1317_v55  ;;  %v662_v53 = vmul.f32 0.33333334, %v2066_v5 }
 0x311   : > { %v1355_v60 = vmax.f32 %v1351_v28, 0.0  ;;  %1648 = vmatpush3.msra.mxu0 %v1356_v26  ;;  %v1437_v9 = vmul.f32 0.1, %v662_v53 }
 0x312   : > { %1649 = vmatprep.subr.mxu0 %v1725_v62 }
 0x313   : > { %1650 = vmatpush3.msra.mxu0 %v1355_v60 }
 0x314   : > { %1651 = vmatprep.subr.mxu0 %v1725_v62 }
 0x315   : > { %1652 = vmatpush3.msra.mxu0 %v1354_v6 }
 0x316   : > { %1653 = vmatprep.subr.mxu0 %v1725_v62 }
 0x317   : > { %1654 = vmatpush3.msra.mxu0 %v1353_v7 }
 0x318   : > { %1656 = vmatmul.mubr.msk.f32.vlgmr.msra.gmra.mxu0 %vm572_vm14, %v1357_v52 }
 0x3d8   : > { %v1433_v56 = vpop.f32.mrf.mxu0 }
 0x3d9   : > { %v1434_v8 = vadd.f32 %v1433_v56, %v1362_v54 }
 0x3da   : > { %v1657_v11 = vpop.f32.mrf.mxu0 }
 0x3db   : > { %v1438_v12 = vadd.f32 %v1437_v9, %v1434_v8 }
 0x3dd   : > { %v1440_v13 = vmul.f32 %v1439_v10, %v1438_v12 }
 0x3df   : > { %v1441_v14 = vadd.f32 %v1440_v13, %v1847_v2 }
 0x3e1   : > { %1442 = vst [vmem:[%s530_s19] sm:$0x7] %v1441_v14 }
 0x3e2 PF: > { %s27_s21 = sadd.s32 1, %s1714_s21  }
 0x3e3   : > { %p24_p1 = scmp.ge.s32.totalorder %s27_s21, 4  }
 0x3e5   :  { %26 = sbr.rel (!%p24_p1) target bundleno = 3 (0x3), region = 119 }
 0x3ea   :  { %1462 = vsyncpa [#allocation3], 1 }
 0x3eb   :  { %1464 = vsyncpa [#allocation3 + $0x1], 1 }

</bundles_post_ra>
